<compile_context>
chip_gen: v6e
topology: v6e:2x2x1
jax: 0.10.0
libtpu: 0.0.40
codegen_flags: <defaults>
</compile_context>

<pallas_src>
import functools

import jax
import jax.numpy as jnp
from jax import lax
from jax.experimental import pallas as pl
from jax.experimental.pallas import tpu as pltpu


def _round_up(x, k):
    return ((x + k - 1) // k) * k


def _cdiv(a, b):
    return -(-a // b)


def _mds_kernel(bi_ref, bj_ref, mode_ref, d1_ref, d2_ref, out_ref, *, n, m, out_cols):
    """One upper-triangle block -> (1, 8, out_cols) f32 partial-sum slab.

    bi_ref / bj_ref / mode_ref: (T,) int32 block coords + interior flag (SMEM).
    d1_ref / d2_ref:            (tr, tc) tiles of the distance matrices (VMEM).
    out_ref:                    (1, 8, out_cols) per-block partial sums (VMEM).
    """
    t = pl.program_id(0)

    d1 = d1_ref[...].astype(jnp.float32)
    d2 = d2_ref[...].astype(jnp.float32)
    tr, tc = d1.shape
    diff = d1 - d2

    def fold_and_store(sq):
        # (tr, tc) -> (8, tc): layout-preserving sublane-axis split + VPU adds.
        partial = sq.reshape(tr // 8, 8, tc).sum(axis=0)
        if out_cols != tc:
            # (8, tc) -> (8, tc//128, 128): layout-preserving lane-axis split,
            # then a handful of vreg adds. Shrinks writeback by tc/128x.
            partial = partial.reshape(8, tc // out_cols, out_cols).sum(axis=1)
        out_ref[...] = partial[None, :, :]

    @pl.when(mode_ref[t] != 0)
    def _():
        # Interior fast path: block fully above the diagonal and fully in
        # bounds -> no iota / compare / select, just sub + mul + adds.
        fold_and_store(diff * diff)

    @pl.when(mode_ref[t] == 0)
    def _():
        # Diagonal / edge block: mask BEFORE squaring so garbage padding
        # (possibly NaN/Inf) in out-of-range rows/cols is zeroed.
        bi = bi_ref[t]
        bj = bj_ref[t]
        row = lax.broadcasted_iota(jnp.int32, (tr, tc), 0) + bi * tr
        col = lax.broadcasted_iota(jnp.int32, (tr, tc), 1) + bj * tc
        mask = (col >= row) & (row < n) & (col < m)
        md = jnp.where(mask, diff, jnp.float32(0.0))
        fold_and_store(md * md)


def _choose_tiles(n, m, itemsize, block_rows=None, block_cols=None):
    """Generation-aware, square-ish tile sizes + VMEM limit."""
    try:
        vmem_cap = int(pltpu.get_tpu_info().vmem_capacity_bytes)
    except Exception:
        vmem_cap = 64 << 20  # conservative fallback (v7x per-TC capacity)

    # Double-buffered inputs (2 arrays x 2 pipeline buffers) <= ~25% of VMEM.
    input_budget = vmem_cap // 4
    tile_elems = max(input_budget // (2 * 2 * itemsize), 16 * 128)

    # Square-ish lane-aligned side (power-of-two multiple of 128) so the
    # upper-triangle block filter can actually skip lower-triangle blocks.
    side = 128
    while (2 * side) * (2 * side) <= tile_elems and 2 * side <= 2048:
        side *= 2

    if block_cols is not None:
        tc = block_cols
    elif m < 128:
        tc = m                                   # full width (legal block extent)
    else:
        tc = min(side, _round_up(m, 128))

    if block_rows is not None:
        tr = block_rows
    else:
        # Fill the remaining per-tile budget, stay <= 2:1 aspect, multiple of
        # 16 (bf16 packed-sublane friendly), never bigger than the padded rows.
        tr_budget = max(16, ((tile_elems // max(tc, 1)) // 16) * 16)
        tr = max(16, min(_round_up(n, 16), tr_budget, 2 * side))

    assert tr % 8 == 0, tr
    assert tc == m or tc % 128 == 0, tc

    vmem_limit = min(int(vmem_cap * 3 // 4), 96 << 20)
    return tr, tc, vmem_limit


def mds_loss(distances1, distances2, *, block_rows=None, block_cols=None):
    """Pallas equivalent of MDSLoss.forward. Returns (scalar_loss, {})."""
    n, m = distances1.shape
    assert distances2.shape == (n, m), "shapes must match for element gather"

    # Number of (i, j) pairs with j >= i, i < n, j < m (== triu_indices count).
    num_elements = sum(max(0, m - i) for i in range(min(n, m)))
    if num_elements == 0:
        return jnp.float32(0.0), {}   # guard 0/0 -> NaN for degenerate shapes

    itemsize = jnp.dtype(distances1.dtype).itemsize
    tr, tc, vmem_limit = _choose_tiles(n, m, itemsize, block_rows, block_cols)
    n_row_blocks = _cdiv(n, tr)
    n_col_blocks = _cdiv(m, tc)

    # Enumerate only blocks intersecting the upper triangle; flag blocks that
    # are fully above the diagonal and fully in bounds (unmasked fast path).
    pairs = []
    for bi in range(n_row_blocks):
        for bj in range(n_col_blocks):
            if (bj + 1) * tc <= bi * tr:          # entirely below the diagonal
                continue
            interior = (bj * tc >= bi * tr + tr - 1
                        and (bi + 1) * tr <= n
                        and (bj + 1) * tc <= m)
            pairs.append((bi, bj, 1 if interior else 0))
    num_blocks = len(pairs)

    bi_arr = jnp.asarray([p[0] for p in pairs], dtype=jnp.int32)
    bj_arr = jnp.asarray([p[1] for p in pairs], dtype=jnp.int32)
    mode_arr = jnp.asarray([p[2] for p in pairs], dtype=jnp.int32)

    out_cols = 128 if tc % 128 == 0 else tc

    kernel = functools.partial(_mds_kernel, n=n, m=m, out_cols=out_cols)

    cost = pl.CostEstimate(
        flops=3 * n * m,                 # sub + mul + add per element (approx)
        transcendentals=0,
        bytes_accessed=2 * n * m * itemsize + num_blocks * 8 * out_cols * 4,
    )

    partials = pl.pallas_call(
        kernel,
        out_shape=jax.ShapeDtypeStruct((num_blocks, 8, out_cols), jnp.float32),
        grid_spec=pltpu.PrefetchScalarGridSpec(
            num_scalar_prefetch=3,
            grid=(num_blocks,),
            in_specs=[
                pl.BlockSpec((tr, tc), lambda t, bi, bj, md: (bi[t], bj[t])),
                pl.BlockSpec((tr, tc), lambda t, bi, bj, md: (bi[t], bj[t])),
            ],
            out_specs=pl.BlockSpec((1, 8, out_cols), lambda t, bi, bj, md: (t, 0, 0)),
        ),
        compiler_params=pltpu.CompilerParams(
            # No carried state -> block axis is independent (megacore / dual-TC).
            dimension_semantics=("parallel",),
            vmem_limit_bytes=vmem_limit,
        ),
        cost_estimate=cost,
    )(bi_arr, bj_arr, mode_arr, distances1, distances2)

    sum_sq = jnp.sum(partials)           # single tiny reduction in the wrapper
    l2 = jnp.sqrt(sum_sq)
    normalized = l2 / jnp.sqrt(jnp.float32(num_elements))
    return normalized, {}


def _reference(d1, d2):
    """Pure-JAX reference identical to the PyTorch forward."""
    n, m = d1.shape
    rows, cols = jnp.triu_indices(n, k=0, m=m)
    u1 = d1[rows, cols].astype(jnp.float32)
    u2 = d2[rows, cols].astype(jnp.float32)
    l2 = jnp.linalg.norm(u1 - u2)
    return l2 / jnp.sqrt(jnp.float32(u1.size))


if __name__ == "__main__":
    key = jax.random.PRNGKey(0)
    k1, k2, k3, k4, k5, k6 = jax.random.split(key, 6)

    # Case 1: small square distance matrices, single masked block.
    N, M = 16, 16
    d1 = jax.random.uniform(k1, (N, M), dtype=jnp.float32)
    d2 = jax.random.uniform(k2, (N, M), dtype=jnp.float32)
    loss, aux = mds_loss(d1, d2)
    loss = jax.block_until_ready(loss)
    ref = jax.block_until_ready(_reference(d1, d2))
    assert aux == {}
    assert abs(float(loss) - float(ref)) < 1e-5, (float(loss), float(ref))

    # Case 2: rectangular + rows not divisible by the tile -> multi-block grid,
    # edge masking, full-width (tc = m) column path.
    e1 = jax.random.uniform(k3, (20, 40), dtype=jnp.float32)
    e2 = jax.random.uniform(k4, (20, 40), dtype=jnp.float32)
    loss2, _ = mds_loss(e1, e2, block_rows=8)
    loss2 = jax.block_until_ready(loss2)
    ref2 = jax.block_until_ready(_reference(e1, e2))
    assert abs(float(loss2) - float(ref2)) < 1e-5, (float(loss2), float(ref2))

    # Case 3: forced small tiles on a 256x256 input -> exercises lower-triangle
    # block skipping, the interior (unmasked) fast path and the lane fold.
    f1 = jax.random.uniform(k5, (256, 256), dtype=jnp.float32)
    f2 = jax.random.uniform(k6, (256, 256), dtype=jnp.float32)
    loss3, _ = mds_loss(f1, f2, block_rows=64, block_cols=128)
    loss3 = jax.block_until_ready(loss3)
    ref3 = jax.block_until_ready(_reference(f1, f2))
    assert abs(float(loss3) - float(ref3)) < 1e-4, (float(loss3), float(ref3))

    print("KERNEL_OK")
</pallas_src>

<mosaic_0001>
module attributes {stable_mosaic.version = 11 : i64} {
  func.func @_mds_kernel(%arg0: i32, %arg1: memref<1xi32, #tpu.memory_space<smem>>, %arg2: memref<1xi32, #tpu.memory_space<smem>>, %arg3: memref<1xi32, #tpu.memory_space<smem>>, %arg4: memref<16x16xf32, #tpu.memory_space<vmem>>, %arg5: memref<16x16xf32, #tpu.memory_space<vmem>>, %arg6: memref<1x8x16xf32, #tpu.memory_space<vmem>>) attributes {dimension_semantics = [#tpu.dimension_semantics<parallel>], iteration_bounds = array<i64: 1>, scalar_prefetch = 3 : i64, scratch_operands = 0 : i64, tpu.core_type = #tpu.core_type<tc>, window_params = [{transform_indices = @transform_0, window_bounds = array<i64: 16, 16>}, {transform_indices = @transform_1, window_bounds = array<i64: 16, 16>}, {transform_indices = @transform_2, window_bounds = array<i64: 1, 8, 16>}]} {
    %c0 = arith.constant 0 : index
    %c0_0 = arith.constant 0 : index
    %0 = vector.load %arg4[%c0, %c0_0] : memref<16x16xf32, #tpu.memory_space<vmem>>, vector<16x16xf32>
    %c0_1 = arith.constant 0 : index
    %c0_2 = arith.constant 0 : index
    %1 = vector.load %arg5[%c0_1, %c0_2] : memref<16x16xf32, #tpu.memory_space<vmem>>, vector<16x16xf32>
    %2 = arith.subf %0, %1 : vector<16x16xf32>
    %3 = arith.index_cast %arg0 : i32 to index
    %4 = memref.load %arg3[%3] : memref<1xi32, #tpu.memory_space<smem>>
    %c0_i32 = arith.constant 0 : i32
    %5 = arith.cmpi ne, %4, %c0_i32 : i32
    %6 = arith.extui %5 : i1 to i32
    %c0_i32_3 = arith.constant 0 : i32
    %7 = arith.cmpi ne, %6, %c0_i32_3 : i32
    scf.if %7 {
      %13 = arith.mulf %2, %2 : vector<16x16xf32>
      %14 = vector.shape_cast %13 : vector<16x16xf32> to vector<2x8x16xf32>
      %cst = arith.constant dense<0.000000e+00> : vector<8x16xf32>
      %15 = vector.multi_reduction <add>, %14, %cst [0] : vector<2x8x16xf32> to vector<8x16xf32>
      %16 = vector.shape_cast %15 : vector<8x16xf32> to vector<1x8x16xf32>
      %c0_6 = arith.constant 0 : index
      %c0_7 = arith.constant 0 : index
      %c0_8 = arith.constant 0 : index
      %17 = vector.load %arg6[%c0_6, %c0_7, %c0_8] : memref<1x8x16xf32, #tpu.memory_space<vmem>>, vector<1x8x16xf32>
      tpu.vector_store %arg6[%c0_6, %c0_7, %c0_8], %16 {strides = array<i32>} : memref<1x8x16xf32, #tpu.memory_space<vmem>>, vector<1x8x16xf32>,
    } else {
    }
    %8 = arith.index_cast %arg0 : i32 to index
    %9 = memref.load %arg3[%8] : memref<1xi32, #tpu.memory_space<smem>>
    %c0_i32_4 = arith.constant 0 : i32
    %10 = arith.cmpi eq, %9, %c0_i32_4 : i32
    %11 = arith.extui %10 : i1 to i32
    %c0_i32_5 = arith.constant 0 : i32
    %12 = arith.cmpi ne, %11, %c0_i32_5 : i32
    scf.if %12 {
      %13 = arith.index_cast %arg0 : i32 to index
      %14 = memref.load %arg1[%13] : memref<1xi32, #tpu.memory_space<smem>>
      %15 = arith.index_cast %arg0 : i32 to index
      %16 = memref.load %arg2[%15] : memref<1xi32, #tpu.memory_space<smem>>
      %17 = tpu.iota {dimensions = array<i32: 0>} : vector<16x16xi32>
      %c16_i32 = arith.constant 16 : i32
      %18 = arith.muli %14, %c16_i32 : i32
      %19 = vector.broadcast %18 : i32 to vector<16x16xi32>
      %20 = arith.addi %17, %19 : vector<16x16xi32>
      %21 = tpu.iota {dimensions = array<i32: 1>} : vector<16x16xi32>
      %c16_i32_6 = arith.constant 16 : i32
      %22 = arith.muli %16, %c16_i32_6 : i32
      %23 = vector.broadcast %22 : i32 to vector<16x16xi32>
      %24 = arith.addi %21, %23 : vector<16x16xi32>
      %25 = arith.cmpi sge, %24, %20 : vector<16x16xi32>
      %c16_i32_7 = arith.constant 16 : i32
      %26 = vector.broadcast %c16_i32_7 : i32 to vector<16x16xi32>
      %27 = arith.cmpi slt, %20, %26 : vector<16x16xi32>
      %28 = arith.andi %25, %27 : vector<16x16xi1>
      %c16_i32_8 = arith.constant 16 : i32
      %29 = vector.broadcast %c16_i32_8 : i32 to vector<16x16xi32>
      %30 = arith.cmpi slt, %24, %29 : vector<16x16xi32>
      %31 = arith.andi %28, %30 : vector<16x16xi1>
      %cst = arith.constant 0.000000e+00 : f32
      %32 = vector.broadcast %cst : f32 to vector<16x16xf32>
      %33 = arith.select %31, %2, %32 : vector<16x16xi1>, vector<16x16xf32>
      %34 = arith.mulf %33, %33 : vector<16x16xf32>
      %35 = vector.shape_cast %34 : vector<16x16xf32> to vector<2x8x16xf32>
      %cst_9 = arith.constant dense<0.000000e+00> : vector<8x16xf32>
      %36 = vector.multi_reduction <add>, %35, %cst_9 [0] : vector<2x8x16xf32> to vector<8x16xf32>
      %37 = vector.shape_cast %36 : vector<8x16xf32> to vector<1x8x16xf32>
      %c0_10 = arith.constant 0 : index
      %c0_11 = arith.constant 0 : index
      %c0_12 = arith.constant 0 : index
      %38 = vector.load %arg6[%c0_10, %c0_11, %c0_12] : memref<1x8x16xf32, #tpu.memory_space<vmem>>, vector<1x8x16xf32>
      tpu.vector_store %arg6[%c0_10, %c0_11, %c0_12], %37 {strides = array<i32>} : memref<1x8x16xf32, #tpu.memory_space<vmem>>, vector<1x8x16xf32>,
    } else {
    }
    return
  }
  func.func @transform_0(%arg0: i32, %arg1: memref<1xi32, #tpu.memory_space<smem>>, %arg2: memref<1xi32, #tpu.memory_space<smem>>, %arg3: memref<1xi32, #tpu.memory_space<smem>>) -> (i32, i32) {
    %0 = arith.index_cast %arg0 : i32 to index
    %1 = memref.load %arg1[%0] : memref<1xi32, #tpu.memory_space<smem>>
    %2 = arith.index_cast %arg0 : i32 to index
    %3 = memref.load %arg2[%2] : memref<1xi32, #tpu.memory_space<smem>>
    %c0_i32 = arith.constant 0 : i32
    return %1, %3 : i32, i32
  }
  func.func @transform_1(%arg0: i32, %arg1: memref<1xi32, #tpu.memory_space<smem>>, %arg2: memref<1xi32, #tpu.memory_space<smem>>, %arg3: memref<1xi32, #tpu.memory_space<smem>>) -> (i32, i32) {
    %0 = arith.index_cast %arg0 : i32 to index
    %1 = memref.load %arg1[%0] : memref<1xi32, #tpu.memory_space<smem>>
    %2 = arith.index_cast %arg0 : i32 to index
    %3 = memref.load %arg2[%2] : memref<1xi32, #tpu.memory_space<smem>>
    %c0_i32 = arith.constant 0 : i32
    return %1, %3 : i32, i32
  }
  func.func @transform_2(%arg0: i32, %arg1: memref<1xi32, #tpu.memory_space<smem>>, %arg2: memref<1xi32, #tpu.memory_space<smem>>, %arg3: memref<1xi32, #tpu.memory_space<smem>>) -> (i32, i32, i32) {
    %c0_i32 = arith.constant 0 : i32
    %c0_i32_0 = arith.constant 0 : i32
    %c0_i32_1 = arith.constant 0 : i32
    return %arg0, %c0_i32, %c0_i32_0 : i32, i32, i32
  }
}

</mosaic_0001>

<bundles_post_ra>
// kernel: tpu_custom_call.1
= control target key start
LH: loop header
LB: loop body
LE: loop exit
PB: predicated region body
PF: predicated region fallthrough
CT: control target
= control target key end

     0   :  { %s311_s0 = inlined_call_operand.<no memory space> [shape: s32[1], index: 0, kind: input, shape index: {}]   ;;  %s312_s1 = inlined_call_operand.<no memory space> [shape: s32[1], index: 1, kind: input, shape index: {}]   ;;  %s313_s2 = inlined_call_operand.<no memory space> [shape: s32[1], index: 2, kind: input, shape index: {}]   ;;  %s314_s3 = inlined_call_operand.hbm [shape: f32[16,16], index: 3, kind: input, shape index: {}]   ;;  %s315_s4 = inlined_call_operand.hbm [shape: f32[16,16], index: 4, kind: input, shape index: {}]   ;;  %s316_s5 = inlined_call_operand.hbm [shape: f32[1,8,16], index: 5, kind: output, shape index: {}]  }
   0x1   :  { %10 = sst [smem:[#allocation3]] %s311_s0 }
   0x2   :  { %11 = sst [smem:[#allocation4]] %s312_s1 }
   0x3   :  { %12 = sst [smem:[#allocation5]] %s313_s2 }
   0x4   :  { %13 = vsyncpa [#allocation7], 0 }
   0x5   :  { %14 = vsyncpa [#allocation10], 0 }
   0x6   :  { %15 = vsyncpa [#allocation8], 0  ;;  %s18_s24 = sld [smem:[#allocation3]]  ;;  %s226_s26 = smov [#allocation6]  }
   0x7   :  { %s19_s25 = sld [smem:[#allocation4]]  ;;  %s27_s27 = sshll.u32 %s226_s26, 4  ;;  %s270_s27 = int_to_ptr.vmem [resolvable:$true] %s27_s27 }
   0x8   :  { %s227_s28 = smov [#allocation9]   ;;  %s158_s14 = scalar_lea.hbm %s314_s3, 256 }
   0x9   :  { %s45_s29 = sshll.u32 %s227_s28, 4  ;;  %s272_s29 = int_to_ptr.vmem [resolvable:$true] %s45_s29 }
   0xc   :  { %s143_s0 = sshll.u32 %s18_s24, 1 }
   0xd   :  { %s24_s30 = sadd.s32 %s143_s0, %s19_s25 }
   0xe   :  { %s144_s6 = sshll.u32 %s24_s30, 7 }
   0xf   :  { %s26_s2 = scalar_lea.hbm %s314_s3, %s144_s6  ;;  %s280_s10 = scalar_lea.hbm %s315_s4, %s144_s6 }
  0x10   :  { %s156_s11 = scalar_lea.hbm %s26_s2, 256  ;;  %p159_p1 = scmp.lt.s32.totalorder %s26_s2, %s314_s3 }
  0x11   :  { %p157_p0 = scmp.ne.s32.totalorder %s26_s2, %s156_s11  ;;  %p160_p2 = scmp.lt.s32.totalorder %s158_s14, %s156_s11 }
  0x13   :  { %p161_p3 = por %p160_p2, %p159_p1 }
  0x15   :  { %p162_p4 = pnand %p161_p3, %p157_p0 }
  0x17   :  { %165 = shalt.err (!%p162_p4)
}
  0x18   :  { %s166_s17 = scalar_lea.vmem %s270_s27, 256  ;;  %p171_p6 = scmp.lt.s32.totalorder %s270_s27, %s270_s27 }
  0x19   :  { %p167_p5 = scmp.ne.s32.totalorder %s270_s27, %s166_s17  ;;  %p172_p7 = scmp.lt.s32.totalorder %s166_s17, %s166_s17 }
  0x1b   :  { %p173_p8 = por %p172_p7, %p171_p6 }
  0x1d   :  { %p174_p9 = pnand %p173_p8, %p167_p5 }
  0x1f   :  { %177 = shalt.err (!%p174_p9)
}
  0x20   :  { %s228_s18 = smov 128   ;;  %s229_s3 = smov 8  }
  0x21   :  { %33 = dma.hbm_to_vmem [thread:$0]  %s26_s2, 256, %s270_s27, [#allocation7], %s228_s18, %s228_s18, %s229_s3  }
  0x22   :  { %s178_s19 = scalar_lea.hbm %s280_s10, 256  ;;  %s180_s22 = scalar_lea.hbm %s315_s4, 256 }
  0x23   :  { %p179_p10 = scmp.ne.s32.totalorder %s280_s10, %s178_s19  ;;  %p181_p11 = scmp.lt.s32.totalorder %s280_s10, %s315_s4 }
  0x24   :  { %p182_p12 = scmp.lt.s32.totalorder %s180_s22, %s178_s19 }
  0x26   :  { %p183_p13 = por %p182_p12, %p181_p11 }
  0x28   :  { %p184_p0 = pnand %p183_p13, %p179_p10 }
  0x2a   :  { %187 = shalt.err (!%p184_p0)
}
  0x2b   :  { %s188_s25 = scalar_lea.vmem %s272_s29, 256  ;;  %p193_p2 = scmp.lt.s32.totalorder %s272_s29, %s272_s29 }
  0x2c   :  { %p189_p1 = scmp.ne.s32.totalorder %s272_s29, %s188_s25  ;;  %p194_p3 = scmp.lt.s32.totalorder %s188_s25, %s188_s25 }
  0x2e   :  { %p195_p4 = por %p194_p3, %p193_p2 }
  0x30   :  { %p196_p5 = pnand %p195_p4, %p189_p1 }
  0x32   :  { %199 = shalt.err (!%p196_p5)
}
  0x33   :  { %51 = dma.hbm_to_vmem [thread:$0]  %s280_s10, 256, %s272_s29, [#allocation10], %s228_s18, %s228_s18, %s229_s3  }
  0x34   :  { %220 = dma.done.wait [#allocation7], 256  }
  0x35   :  { %221 = vsyncadd [#allocation7], 4294967040 }
  0x36   :  { %222 = dma.done.wait [#allocation10], 256  }
  0x37   :  { %223 = vsyncadd [#allocation10], 4294967040  ;;  %s70_s4 = sld [smem:[#allocation5]]  ;;  %v64_v0 = vld [vmem:[#allocation6] sm:$0xff]  ;;  %v65_v1 = vld [vmem:[#allocation6 + $0x8] sm:$0xff] }
  0x38   :  { %v66_v2 = vld [vmem:[#allocation9] sm:$0xff]  ;;  %v67_v3 = vld [vmem:[#allocation9 + $0x8] sm:$0xff] }
  0x39   :  { %v68_v4 = vsub.f32 %v64_v0, %v66_v2  ;;  %v69_v5 = vsub.f32 %v65_v1, %v67_v3 }
  0x3d   :  { %p147_p6 = scmp.eq.s32.totalorder %s70_s4, 0 }
  0x3f   :  { %74 = sbr.rel (%p147_p6) target bundleno = 74 (0x4a), region = 21 }
  0x44   :  { %v75_v6 = vmul.f32 %v68_v4, %v68_v4  ;;  %v76_v7 = vmul.f32 %v69_v5, %v69_v5  ;;  %vm77_vm0 = vcmask 130048  }
  0x46   :  { %v78_v8 = vsel %vm77_vm0, %v75_v6, 0.0  ;;  %v79_v9 = vsel %vm77_vm0, %v76_v7, 0.0 }
  0x47   :  { %v80_v10 = vadd.f32 %v79_v9, %v78_v8 }
  0x49   :  { %81 = vst.msk [vmem:[#allocation11] sm:$0xff] %vm77_vm0, %v80_v10 }
  0x4a PF:  { %s82_s26 = sld [smem:[#allocation5]] }
  0x50   :  { %p148_p7 = scmp.ne.s32.totalorder %s82_s26, 0 }
  0x51   :  { %s87_s27 = sld [smem:[#allocation3]] (!%p148_p7) }
  0x52   :  { %86 = sbr.rel (%p148_p7) target bundleno = 105 (0x69), region = 25  ;;  %s88_s28 = sld [smem:[#allocation4]] (!%p148_p7) }
  0x57   :  { %v89_v11 = vlaneseq  ;;  %s149_s29 = sshll.u32 %s87_s27, 4  ;;  %vm114_vm10 = vcmask 130048  }
  0x58   :  { %v93_v15 = vstv %s149_s29  ;;  %s150_s0 = sshll.u32 %s88_s28, 4 }
  0x59   :  { %v90_v12 = vshrl.u32 %v89_v11, 7  ;;  %v97_v14 = vand.u32 127, %v89_v11  ;;  %v99_v18 = vstv %s150_s0 }
  0x5b   :  { %v91_v13 = vadd.s32 8, %v90_v12  ;;  %v94_v16 = vadd.s32 %v93_v15, %v90_v12  ;;  %v100_v19 = vadd.s32 %v99_v18, %v97_v14 }
  0x5d   :  { %v95_v17 = vadd.s32 %v93_v15, %v91_v13  ;;  %vm103_vm1 = vcmp.lt.s32.totalorder %v94_v16, 16  ;;  %vm101_vm3 = vcmp.ge.s32.totalorder %v100_v19, %v94_v16  ;;  %vm107_vm5 = vcmp.lt.s32.totalorder %v100_v19, 16 }
  0x5e   :  { %vm105_vm6 = vmand %vm101_vm3, %vm103_vm1 }
  0x5f   :  { %vm104_vm2 = vcmp.lt.s32.totalorder %v95_v17, 16  ;;  %vm102_vm4 = vcmp.ge.s32.totalorder %v100_v19, %v95_v17  ;;  %vm108_vm8 = vmand %vm105_vm6, %vm107_vm5 }
  0x60   :  { %vm106_vm7 = vmand %vm102_vm4, %vm104_vm2  ;;  %v110_v20 = vsel %vm108_vm8, %v68_v4, 0.0 }
  0x61   :  { %vm109_vm9 = vmand %vm106_vm7, %vm107_vm5  ;;  %v112_v22 = vmul.f32 %v110_v20, %v110_v20 }
  0x62   :  { %v111_v21 = vsel %vm109_vm9, %v69_v5, 0.0 }
  0x63   :  { %v113_v23 = vmul.f32 %v111_v21, %v111_v21  ;;  %v115_v24 = vsel %vm114_vm10, %v112_v22, 0.0 }
  0x65   :  { %v116_v25 = vsel %vm114_vm10, %v113_v23, 0.0 }
  0x66   :  { %v117_v26 = vadd.f32 %v116_v25, %v115_v24 }
  0x68   :  { %118 = vst.msk [vmem:[#allocation11] sm:$0xff] %vm114_vm10, %v117_v26 }
  0x69 PF:  { %s230_s30 = smov [#allocation11]  }
  0x6a   :  { %s125_s6 = sshll.u32 %s230_s30, 4  ;;  %s126_s6 = int_to_ptr.vmem [resolvable:$true] %s125_s6 }
  0x6b   :  { %s200_s1 = scalar_lea.vmem %s126_s6, 128  ;;  %p205_p9 = scmp.lt.s32.totalorder %s126_s6, %s126_s6 }
  0x6c   :  { %p201_p8 = scmp.ne.s32.totalorder %s126_s6, %s200_s1  ;;  %p206_p10 = scmp.lt.s32.totalorder %s200_s1, %s200_s1 }
  0x6e   :  { %p207_p11 = por %p206_p10, %p205_p9 }
  0x70   :  { %p208_p12 = pnand %p207_p11, %p201_p8 }
  0x72   :  { %211 = shalt.err (!%p208_p12)
}
  0x73   :  { %128 = dma.vmem_to_hbm [thread:$0]  %s126_s6, 128, %s316_s5, [#allocation8]  }
  0x74   :  { %224 = dma.done.wait [#allocation8], 128  }
  0x75   :  { %225 = vsyncadd [#allocation8], 4294967168 }
  0x76   :  { %132 = vsyncpa [#allocation7], 1 }
  0x77   :  { %133 = vsyncpa [#allocation10], 1 }
  0x78   :  { %134 = vsyncpa [#allocation8], 1 }

</bundles_post_ra>
